<compile_context>
chip_gen: v7x
topology: tpu7x:2x2x1
jax: 0.10.0
libtpu: 0.0.40
codegen_flags: <defaults>
</compile_context>

<pallas_src>
import jax
import jax.numpy as jnp
from jax.experimental import pallas as pl
from jax.experimental.pallas import tpu as pltpu


def _odefunc_kernel(t_ref, y_ref, yo_ref, w1_ref, b1_ref, w2_ref, b2_ref, o_ref):
    # y_ref / yo_ref : [1, BN]   (batch on lanes)
    # w1_ref : [50, 3]   b1_ref : [50, 1]   w2_ref : [50, 1]
    # t_ref / b2_ref : SMEM scalars, shape (1,)
    sy = jnp.sin(y_ref[...])                                        # [1, BN] (EUP)
    syo = jnp.sin(yo_ref[...])                                      # [1, BN]
    st = jnp.sin(jnp.full((1, 1), t_ref[0], dtype=jnp.float32))     # [1, 1]

    w1 = w1_ref[...]                                                # [50, 3]
    # Effective bias column: w1[:,2]*sin(t) + b1  -> [50, 1] (shared by all lanes)
    bias_eff = w1[:, 2:3] * st + b1_ref[...]
    # First Linear(3,50) as 3 rank-1 VPU FMAs over [50, BN] -- no MXU.
    h = w1[:, 0:1] * sy + w1[:, 1:2] * syo + bias_eff
    h = jnp.tanh(h)                                                 # [50, BN] (EUP)

    # Second Linear(50,1): multiply by w2 column, reduce over the hidden
    # (sublane) axis -> lane-dense [1, BN] output.
    o = jnp.sum(h * w2_ref[...], axis=0, keepdims=True)
    o_ref[...] = (o + b2_ref[0]).astype(o_ref.dtype)


def odefunc_slow_forward(t, y, y_other_dim, params, *, block_n=1024):
    """Pallas equivalent of ODEFunc_slow.forward(t, y, y_other_dim).

    params use PyTorch-native layout: w1 [50,3], b1 [50], w2 [1,50], b2 [1].
    Returns [N, 1] like the PyTorch module.
    """
    w1, b1, w2, b2 = params
    n = y.shape[0]

    # Lane-dense layout: batch on the last (lane) axis, padded to a multiple
    # of the lane block size (>=128).
    n_pad = pl.cdiv(n, 128) * 128
    bn = min(block_n, n_pad)
    n_pad = pl.cdiv(n_pad, bn) * bn
    pad = n_pad - n

    y_row = jnp.pad(y.reshape(1, n).astype(jnp.float32), ((0, 0), (0, pad)))
    yo_row = jnp.pad(y_other_dim.reshape(1, n).astype(jnp.float32),
                     ((0, 0), (0, pad)))

    t_arr = jnp.asarray([t], dtype=jnp.float32)               # SMEM scalar
    b2_arr = jnp.asarray(b2, dtype=jnp.float32).reshape(1)    # SMEM scalar
    w1_mat = w1.astype(jnp.float32)                           # [50, 3]
    b1_col = b1.astype(jnp.float32).reshape(-1, 1)            # [50, 1]
    w2_col = w2.astype(jnp.float32).reshape(-1, 1)            # [50, 1]

    out_row = pl.pallas_call(
        _odefunc_kernel,
        out_shape=jax.ShapeDtypeStruct((1, n_pad), jnp.float32),
        grid_spec=pltpu.PrefetchScalarGridSpec(
            num_scalar_prefetch=0,
            grid=(n_pad // bn,),
            in_specs=[
                pl.BlockSpec(memory_space=pltpu.SMEM),                # t
                pl.BlockSpec((1, bn), lambda i: (0, i)),              # y row
                pl.BlockSpec((1, bn), lambda i: (0, i)),              # y_other row
                pl.BlockSpec(tuple(w1_mat.shape), lambda i: (0, 0)),  # w1 (resident)
                pl.BlockSpec(tuple(b1_col.shape), lambda i: (0, 0)),  # b1
                pl.BlockSpec(tuple(w2_col.shape), lambda i: (0, 0)),  # w2
                pl.BlockSpec(memory_space=pltpu.SMEM),                # b2
            ],
            out_specs=pl.BlockSpec((1, bn), lambda i: (0, i)),
        ),
        compiler_params=pltpu.CompilerParams(
            dimension_semantics=("parallel",)),
    )(t_arr, y_row, yo_row, w1_mat, b1_col, w2_col, b2_arr)

    # Lane-dense [1, n_pad] back to the module's [N, 1].
    return out_row[0, :n].reshape(n, 1)


def init_params(key, dim_in=3, hidden=50, dim_out=1):
    # nn.init.normal_(weight, mean=0, std=0.1); bias = 0  (PyTorch-native layout)
    k1, k2 = jax.random.split(key)
    w1 = 0.1 * jax.random.normal(k1, (hidden, dim_in), dtype=jnp.float32)   # [50, 3]
    b1 = jnp.zeros((hidden,), dtype=jnp.float32)                            # [50]
    w2 = 0.1 * jax.random.normal(k2, (dim_out, hidden), dtype=jnp.float32)  # [1, 50]
    b2 = jnp.zeros((dim_out,), dtype=jnp.float32)                           # [1]
    return (w1, b1, w2, b2)


if __name__ == "__main__":
    key = jax.random.PRNGKey(0)
    kp, ky, kz = jax.random.split(key, 3)

    N = 8  # small batch of ODE states
    params = init_params(kp)
    y = jax.random.normal(ky, (N,), dtype=jnp.float32)
    y_other = jax.random.normal(kz, (N,), dtype=jnp.float32)
    t = 0.5

    out = odefunc_slow_forward(t, y, y_other, params)
    jax.block_until_ready(out)

    # Pure-JAX reference (matches the PyTorch module semantics).
    w1, b1, w2, b2 = params
    x = jnp.concatenate(
        [y.reshape(N, 1), y_other.reshape(N, 1),
         jnp.full((N, 1), t, dtype=jnp.float32)], axis=1)
    ref = jnp.tanh(jnp.sin(x) @ w1.T + b1) @ w2.T + b2
    assert out.shape == (N, 1)
    assert jnp.allclose(out, ref, atol=1e-5, rtol=1e-5)

    print("KERNEL_OK")
</pallas_src>

<mosaic_0001>
module attributes {stable_mosaic.version = 11 : i64} {
  func.func @_odefunc_kernel(%arg0: i32, %arg1: memref<1xf32, #tpu.memory_space<smem>>, %arg2: memref<1x128xf32, #tpu.memory_space<vmem>>, %arg3: memref<1x128xf32, #tpu.memory_space<vmem>>, %arg4: memref<50x3xf32, #tpu.memory_space<vmem>>, %arg5: memref<50x1xf32, #tpu.memory_space<vmem>>, %arg6: memref<50x1xf32, #tpu.memory_space<vmem>>, %arg7: memref<1xf32, #tpu.memory_space<smem>>, %arg8: memref<1x128xf32, #tpu.memory_space<vmem>>) attributes {dimension_semantics = [#tpu.dimension_semantics<parallel>], iteration_bounds = array<i64: 1>, scalar_prefetch = 0 : i64, scratch_operands = 0 : i64, tpu.core_type = #tpu.core_type<tc>, window_params = [{transform_indices = @transform_0, window_bounds = array<i64: 1>}, {transform_indices = @transform_1, window_bounds = array<i64: 1, 128>}, {transform_indices = @transform_2, window_bounds = array<i64: 1, 128>}, {pipeline_mode = #tpu.pipeline_mode<synchronous>, transform_indices = @transform_3, window_bounds = array<i64: 50, 3>}, {pipeline_mode = #tpu.pipeline_mode<synchronous>, transform_indices = @transform_4, window_bounds = array<i64: 50, 1>}, {pipeline_mode = #tpu.pipeline_mode<synchronous>, transform_indices = @transform_5, window_bounds = array<i64: 50, 1>}, {transform_indices = @transform_6, window_bounds = array<i64: 1>}, {transform_indices = @transform_7, window_bounds = array<i64: 1, 128>}]} {
    %c0 = arith.constant 0 : index
    %c0_0 = arith.constant 0 : index
    %0 = vector.load %arg2[%c0, %c0_0] : memref<1x128xf32, #tpu.memory_space<vmem>>, vector<1x128xf32>
    %1 = math.sin %0 : vector<1x128xf32>
    %c0_1 = arith.constant 0 : index
    %c0_2 = arith.constant 0 : index
    %2 = vector.load %arg3[%c0_1, %c0_2] : memref<1x128xf32, #tpu.memory_space<vmem>>, vector<1x128xf32>
    %3 = math.sin %2 : vector<1x128xf32>
    %c0_3 = arith.constant 0 : index
    %4 = memref.load %arg1[%c0_3] : memref<1xf32, #tpu.memory_space<smem>>
    %5 = vector.broadcast %4 : f32 to vector<1x1xf32>
    %6 = math.sin %5 : vector<1x1xf32>
    %c0_4 = arith.constant 0 : index
    %c0_5 = arith.constant 0 : index
    %7 = vector.load %arg4[%c0_4, %c0_5] : memref<50x3xf32, #tpu.memory_space<vmem>>, vector<50x3xf32>
    %8 = vector.extract_strided_slice %7 {offsets = [0, 2], sizes = [50, 1], strides = [1, 1]} : vector<50x3xf32> to vector<50x1xf32>
    %9 = vector.broadcast %6 : vector<1x1xf32> to vector<50x1xf32>
    %10 = arith.mulf %8, %9 : vector<50x1xf32>
    %c0_6 = arith.constant 0 : index
    %c0_7 = arith.constant 0 : index
    %11 = vector.load %arg5[%c0_6, %c0_7] : memref<50x1xf32, #tpu.memory_space<vmem>>, vector<50x1xf32>
    %12 = arith.addf %10, %11 : vector<50x1xf32>
    %13 = vector.extract_strided_slice %7 {offsets = [0, 0], sizes = [50, 1], strides = [1, 1]} : vector<50x3xf32> to vector<50x1xf32>
    %14 = vector.broadcast %13 : vector<50x1xf32> to vector<50x128xf32>
    %15 = vector.broadcast %1 : vector<1x128xf32> to vector<50x128xf32>
    %16 = arith.mulf %14, %15 : vector<50x128xf32>
    %17 = vector.extract_strided_slice %7 {offsets = [0, 1], sizes = [50, 1], strides = [1, 1]} : vector<50x3xf32> to vector<50x1xf32>
    %18 = vector.broadcast %17 : vector<50x1xf32> to vector<50x128xf32>
    %19 = vector.broadcast %3 : vector<1x128xf32> to vector<50x128xf32>
    %20 = arith.mulf %18, %19 : vector<50x128xf32>
    %21 = arith.addf %16, %20 : vector<50x128xf32>
    %22 = vector.broadcast %12 : vector<50x1xf32> to vector<50x128xf32>
    %23 = arith.addf %21, %22 : vector<50x128xf32>
    %24 = math.tanh %23 : vector<50x128xf32>
    %c0_8 = arith.constant 0 : index
    %c0_9 = arith.constant 0 : index
    %25 = vector.load %arg6[%c0_8, %c0_9] : memref<50x1xf32, #tpu.memory_space<vmem>>, vector<50x1xf32>
    %26 = vector.broadcast %25 : vector<50x1xf32> to vector<50x128xf32>
    %27 = arith.mulf %24, %26 : vector<50x128xf32>
    %cst = arith.constant dense<0.000000e+00> : vector<128xf32>
    %28 = vector.multi_reduction <add>, %27, %cst [0] : vector<50x128xf32> to vector<128xf32>
    %29 = vector.shape_cast %28 : vector<128xf32> to vector<1x128xf32>
    %c0_10 = arith.constant 0 : index
    %30 = memref.load %arg7[%c0_10] : memref<1xf32, #tpu.memory_space<smem>>
    %31 = vector.broadcast %30 : f32 to vector<1x128xf32>
    %32 = arith.addf %29, %31 : vector<1x128xf32>
    %c0_11 = arith.constant 0 : index
    %c0_12 = arith.constant 0 : index
    %33 = vector.load %arg8[%c0_11, %c0_12] : memref<1x128xf32, #tpu.memory_space<vmem>>, vector<1x128xf32>
    tpu.vector_store %arg8[%c0_11, %c0_12], %32 {strides = array<i32>} : memref<1x128xf32, #tpu.memory_space<vmem>>, vector<1x128xf32>,
    return
  }
  func.func @transform_0(%arg0: i32) -> i32 {
    %c0_i32 = arith.constant 0 : i32
    %c0_i32_0 = arith.constant 0 : i32
    return %c0_i32 : i32
  }
  func.func @transform_1(%arg0: i32) -> (i32, i32) {
    %c0_i32 = arith.constant 0 : i32
    %c0_i32_0 = arith.constant 0 : i32
    return %c0_i32, %arg0 : i32, i32
  }
  func.func @transform_2(%arg0: i32) -> (i32, i32) {
    %c0_i32 = arith.constant 0 : i32
    %c0_i32_0 = arith.constant 0 : i32
    return %c0_i32, %arg0 : i32, i32
  }
  func.func @transform_3(%arg0: i32) -> (i32, i32) {
    %c0_i32 = arith.constant 0 : i32
    %c0_i32_0 = arith.constant 0 : i32
    %c0_i32_1 = arith.constant 0 : i32
    return %c0_i32, %c0_i32_0 : i32, i32
  }
  func.func @transform_4(%arg0: i32) -> (i32, i32) {
    %c0_i32 = arith.constant 0 : i32
    %c0_i32_0 = arith.constant 0 : i32
    %c0_i32_1 = arith.constant 0 : i32
    return %c0_i32, %c0_i32_0 : i32, i32
  }
  func.func @transform_5(%arg0: i32) -> (i32, i32) {
    %c0_i32 = arith.constant 0 : i32
    %c0_i32_0 = arith.constant 0 : i32
    %c0_i32_1 = arith.constant 0 : i32
    return %c0_i32, %c0_i32_0 : i32, i32
  }
  func.func @transform_6(%arg0: i32) -> i32 {
    %c0_i32 = arith.constant 0 : i32
    %c0_i32_0 = arith.constant 0 : i32
    return %c0_i32 : i32
  }
  func.func @transform_7(%arg0: i32) -> (i32, i32) {
    %c0_i32 = arith.constant 0 : i32
    %c0_i32_0 = arith.constant 0 : i32
    return %c0_i32, %arg0 : i32, i32
  }
}

</mosaic_0001>

<bundles_post_ra>
// kernel: tpu_custom_call.1
= control target key start
LH: loop header
LB: loop body
LE: loop exit
PB: predicated region body
PF: predicated region fallthrough
CT: control target
= control target key end

     0   :  { %s725_s28 = smov 2   ;;  %v726_v4 = vmov 0   ;;  %s1081_s0 = inlined_call_operand.<no memory space> [shape: f32[1], index: 0, kind: input, shape index: {}]   ;;  %s1082_s1 = inlined_call_operand.vmem [shape: f32[1,128], index: 1, kind: input, shape index: {}]   ;;  %s1083_s2 = inlined_call_operand.vmem [shape: f32[1,128], index: 2, kind: input, shape index: {}]   ;;  %s1084_s3 = inlined_call_operand.vmem [shape: f32[50,3], index: 3, kind: input, shape index: {}]   ;;  %s1085_s4 = inlined_call_operand.vmem [shape: f32[50,1], index: 4, kind: input, shape index: {}]   ;;  %s1086_s5 = inlined_call_operand.vmem [shape: f32[50,1], index: 5, kind: input, shape index: {}]   ;;  %s1087_s6 = inlined_call_operand.<no memory space> [shape: f32[1], index: 6, kind: input, shape index: {}]   ;;  %s1088_s7 = inlined_call_operand.hbm [shape: f32[1,128], index: 7, kind: output, shape index: {}]  }
   0x1   :  { %v359_v0 = vld [vmem:[%s1085_s4] sm:$0xff]  ;;  %v361_v1 = vld [vmem:[%s1085_s4 + $0x10] sm:$0xff]  ;;  %v360_v2 = vld [vmem:[%s1085_s4 + $0x8] sm:$0xff]  ;;  %662 = vset.pattern.permute.xlu1 %v726_v4  ;;  %663 = vset.pattern.permute.xlu0 %v726_v4  ;;  %v793_v5 = vstv %s1081_s0 }
   0x2   :  { %373 = vrot.lane.b32.xlu0 %v359_v0, %s725_s28  ;;  %377 = vrot.lane.b32.xlu1 %v361_v1, %s725_s28  ;;  %v362_v3 = vld [vmem:[%s1085_s4 + $0x18] sm:$0xff]  ;;  %v241_v6 = vand.u32 2147483647, %v793_v5  ;;  %v244_v7 = vand.u32 2139095040, %v793_v5  ;;  %v364_v8 = vld [vmem:[%s1085_s4 + $0x28] sm:$0xff] }
   0x3   :  { %v363_v9 = vld [vmem:[%s1085_s4 + $0x20] sm:$0xff] }
   0x4   :  { %v806_v10 = vld [vmem:[%s1082_s1] sm:$0x1]  ;;  %v245_v11 = vshrl.u32 %v244_v7, 23  ;;  %v248_v13 = vand.u32 8388607, %v241_v6 }
   0x5   :  { %v33_v12 = vand.u32 2139095040, %v806_v10 }
   0x6   :  { %375 = vrot.lane.b32.xlu0 %v360_v2, %s725_s28  ;;  %379 = vrot.lane.b32.xlu1 %v362_v3, %s725_s28 }
   0x7   :  { %14 = vsyncpa [#allocation5], 0  ;;  %v635_v14 = vadd.s32 4294967169, %v245_v11  ;;  %v34_v15 = vshrl.u32 %v33_v12, 23  ;;  %v365_v16 = vld [vmem:[%s1085_s4 + $0x30] sm:$0x3] }
   0x8   :  { %v817_v17 = vld [vmem:[%s1084_s3] sm:$0xff]  ;;  %v249_v21 = vor.u32 8388608, %v248_v13  ;;  %v828_v23 = vld [vmem:[%s1084_s3 + $0x8] sm:$0xff]  ;;  %v30_v25 = vand.u32 2147483647, %v806_v10  ;;  %v727_v30 = vmov 1  }
   0x9   :  { %v251_v18 = vadd.s32 1, %v635_v14  ;;  %v627_v19 = vadd.s32 4294967169, %v34_v15  ;;  %v822_v20 = vld [vmem:[%s1083_s2] sm:$0x1]  ;;  %v728_v32 = vmov 683565275  }
   0xa   :  { %383 = vrot.lane.b32.xlu1 %v364_v8, %s725_s28  ;;  %381 = vrot.lane.b32.xlu0 %v363_v9, %s725_s28  ;;  %v138_v26 = vand.u32 2139095040, %v822_v20  ;;  %v832_v29 = vshll.u32 %v249_v21, 8  ;;  %v729_v34 = vmov 2475754826   ;;  %v730_v36 = vmov 2131351028  }
   0xb   :  { %vm252_vm0 = vcmp.gt.s32.totalorder %v251_v18, 0  ;;  %v40_v22 = vadd.s32 1, %v627_v19  ;;  %v843_v38 = vld [vmem:[%s1084_s3 + $0x10] sm:$0xff]  ;;  %v731_v39 = vmov 2102212464   ;;  %v861_v56 = vld [vmem:[%s1084_s3 + $0x18] sm:$0xff] }
   0xc   :  { %v253_v24 = vsel %vm252_vm0, %v251_v18, 0  ;;  %v732_v41 = vmov 920167782   ;;  %v37_v43 = vand.u32 8388607, %v30_v25  ;;  %v139_v44 = vshrl.u32 %v138_v26, 23 }
   0xd   :  { %v255_v27 = vand.u32 31, %v253_v24  ;;  %v254_v28 = vshrl.u32 %v253_v24, 5  ;;  %vm41_vm1 = vcmp.gt.s32.totalorder %v40_v22, 0  ;;  %v733_v50 = vmov 1326507024   ;;  %v874_v14 = vld [vmem:[%s1084_s3 + $0x20] sm:$0xff] }
   0xe   :  { %385 = vrot.lane.b32.xlu0 %v365_v16, %s725_s28  ;;  %403 = vperm.xlu1 %662, %v817_v17   ;;  %v42_v52 = vsel %vm41_vm1, %v40_v22, 0  ;;  %v38_v12 = vor.u32 8388608, %v37_v43  ;;  %v631_v26 = vadd.s32 4294967169, %v139_v44  ;;  %s735_s21 = smov [#allocation4]  }
   0xf   :  { %v256_v31 = vsub.s32 32, %v255_v27  ;;  %v258_v33 = vshll.u32 %v728_v32, %v255_v27  ;;  %v261_v35 = vshll.u32 %v729_v34, %v255_v27  ;;  %v264_v37 = vshll.u32 %v730_v36, %v255_v27  ;;  %s619_s22 = sshll.u32 %s735_s21, 4  ;;  %s620_s22 = int_to_ptr.vmem [resolvable:$true] %s619_s22 }
  0x10   :  { %v267_v40 = vshll.u32 %v731_v39, %v255_v27  ;;  %v270_v42 = vshll.u32 %v732_v41, %v255_v27  ;;  %vm273_vm2 = vcmp.lt.s32.totalorder %v254_v28, 1  ;;  %vm276_vm3 = vcmp.lt.s32.totalorder %v254_v28, 4  ;;  %s701_s4 = scalar_lea.vmem %s620_s22, 16  ;;  %s705_s2 = scalar_lea.vmem %s620_s22, 32 }
  0x11   :  { %v257_v45 = vshrl.u32 %v728_v32, %v256_v31  ;;  %v259_v46 = vshrl.u32 %v729_v34, %v256_v31  ;;  %v262_v47 = vshrl.u32 %v730_v36, %v256_v31  ;;  %v265_v48 = vshrl.u32 %v731_v39, %v256_v31  ;;  %p702_p0 = scmp.ne.s32.totalorder %s620_s22, %s701_s4  ;;  %p706_p1 = scmp.lt.s32.totalorder %s620_s22, %s620_s22 }
  0x12   :  { %664 = vset.pattern.permute.xlu1 %v727_v30  ;;  %408 = vperm.xlu0 %663, %v828_v23   ;;  %v268_v49 = vshrl.u32 %v732_v41, %v256_v31  ;;  %v271_v51 = vshrl.u32 %v733_v50, %v256_v31  ;;  %vm274_vm4 = vcmp.lt.s32.totalorder %v254_v28, 2  ;;  %vm275_vm5 = vcmp.lt.s32.totalorder %v254_v28, 3  ;;  %p707_p2 = scmp.lt.s32.totalorder %s705_s2, %s701_s4 }
  0x13   :  { %450 = vperm.xlu1 %664, %v817_v17   ;;  %v260_v53 = vor.u32 %v259_v46, %v258_v33  ;;  %v263_v54 = vor.u32 %v262_v47, %v261_v35  ;;  %v266_v55 = vor.u32 %v265_v48, %v264_v37  ;;  %v44_v2 = vand.u32 31, %v42_v52 }
  0x14   :  { %v269_v57 = vor.u32 %v268_v49, %v267_v40  ;;  %v272_v58 = vor.u32 %v271_v51, %v270_v42  ;;  %v43_v13 = vshrl.u32 %v42_v52, 5  ;;  %v78_v40 = vshll.u32 %v38_v12, 8  ;;  %v900_v42 = vld [vmem:[%s1084_s3 + $0x28] sm:$0xff]  ;;  %p708_p3 = por %p707_p2, %p706_p1 }
  0x15   :  { %v277_v59 = vsel %vm273_vm2, %v257_v45, %v260_v53  ;;  %v278_v60 = vsel %vm276_vm3, %v266_v55, 2102212464  ;;  %v281_v61 = vsel %vm273_vm2, %v260_v53, %v263_v54  ;;  %v285_v62 = vsel %vm273_vm2, %v263_v54, %v266_v55 }
  0x16   :  { %413 = vperm.xlu0 %663, %v843_v38   ;;  %v279_v63 = vsel %vm275_vm5, %v263_v54, %v278_v60  ;;  %v282_v0 = vsel %vm276_vm3, %v269_v57, 920167782  ;;  %v286_v1 = vsel %vm276_vm3, %v272_v58, 1326507024  ;;  %v45_v22 = vsub.s32 32, %v44_v2  ;;  %p709_p4 = pnand %p708_p3, %p702_p0 }
  0x17   :  { %454 = vperm.xlu1 %664, %v828_v23   ;;  %v280_v3 = vsel %vm274_vm4, %v277_v59, %v279_v63  ;;  %v283_v7 = vsel %vm275_vm5, %v266_v55, %v282_v0  ;;  %v287_v8 = vsel %vm275_vm5, %v269_v57, %v286_v1  ;;  %v47_v24 = vshll.u32 %v728_v32, %v44_v2 }
  0x18   :  { %v284_v9 = vsel %vm274_vm4, %v281_v61, %v283_v7  ;;  %v288_v11 = vsel %vm274_vm4, %v285_v62, %v287_v8  ;;  %v296_v21 = vmul.u32 %v832_v29, %v280_v3  ;;  %v50_v27 = vshll.u32 %v729_v34, %v44_v2 }
  0x19   :  { %v877_v15 = vmul.u32.u64.low %v832_v29, %v288_v11  ;;  %v878_v16 = vmul.u32.u64.high %v832_v29, %v288_v11, %v877_v15  ;;  %v881_v18 = vmul.u32.u64.low %v832_v29, %v284_v9  ;;  %v882_v19 = vmul.u32.u64.high %v832_v29, %v284_v9, %v881_v18 }
  0x1a   :  { %418 = vperm.xlu0 %663, %v861_v56   ;;  %v53_v28 = vshll.u32 %v730_v36, %v44_v2  ;;  %v56_v31 = vshll.u32 %v731_v39, %v44_v2  ;;  %v59_v33 = vshll.u32 %v732_v41, %v44_v2  ;;  %v46_v29 = vshrl.u32 %v728_v32, %v45_v22 }
  0x1b   :  { %458 = vperm.xlu1 %664, %v843_v38   ;;  %v48_v35 = vshrl.u32 %v729_v34, %v45_v22  ;;  %v51_v37 = vshrl.u32 %v730_v36, %v45_v22  ;;  %vm298_vm6 = vc.u32 %v878_v16, %v881_v18  ;;  %v299_v43 = vadd.s32 1, %v882_v19 }
  0x1c   :  { %v54_v44 = vshrl.u32 %v731_v39, %v45_v22  ;;  %vm62_vm7 = vcmp.lt.s32.totalorder %v43_v13, 1  ;;  %v57_v47 = vshrl.u32 %v732_v41, %v45_v22  ;;  %v60_v48 = vshrl.u32 %v733_v50, %v45_v22 }
  0x1d   :  { %v49_v45 = vor.u32 %v48_v35, %v47_v24  ;;  %v52_v46 = vor.u32 %v51_v37, %v50_v27  ;;  %v300_v49 = vsel %vm298_vm6, %v299_v43, %v882_v19  ;;  %vm63_vm8 = vcmp.lt.s32.totalorder %v43_v13, 2  ;;  %v935_v24 = vld [vmem:[%s1084_s3 + $0x30] sm:$0x3] }
  0x1e   :  { %666 = vset.pattern.permute.xlu0 %v727_v30  ;;  %v55_v51 = vor.u32 %v54_v44, %v53_v28  ;;  %vm64_vm9 = vcmp.lt.s32.totalorder %v43_v13, 3  ;;  %v301_v52 = vadd.s32 %v300_v49, %v296_v21  ;;  %v58_v53 = vor.u32 %v57_v47, %v56_v31 }
  0x1f   :  { %462 = vperm.xlu1 %664, %v861_v56   ;;  %466 = vperm.xlu0 %666, %v874_v14   ;;  %v61_v54 = vor.u32 %v60_v48, %v59_v33  ;;  %vm65_vm10 = vcmp.lt.s32.totalorder %v43_v13, 4  ;;  %v66_v55 = vsel %vm62_vm7, %v46_v29, %v49_v45  ;;  %v70_v58 = vsel %vm62_vm7, %v49_v45, %v52_v46 }
  0x20   :  { %v67_v57 = vsel %vm65_vm10, %v55_v51, 2102212464  ;;  %v74_v59 = vsel %vm62_vm7, %v52_v46, %v55_v51  ;;  %v302_v60 = vadd.s32 536870912, %v301_v52  ;;  %v71_v62 = vsel %vm65_vm10, %v58_v53, 920167782 }
  0x21   :  { %v68_v61 = vsel %vm64_vm9, %v52_v46, %v67_v57  ;;  %v75_v63 = vsel %vm65_vm10, %v61_v54, 1326507024  ;;  %v72_v1 = vsel %vm64_vm9, %v55_v51, %v71_v62  ;;  %v145_v3 = vadd.s32 1, %v631_v26 }
  0x22   :  { %v69_v0 = vsel %vm63_vm8, %v66_v55, %v68_v61  ;;  %v76_v2 = vsel %vm64_vm9, %v58_v53, %v75_v63  ;;  %v919_v7 = vshrl.u32 %v302_v60, 30  ;;  %v734_v8 = vmov 2  }
  0x23   :  { %665 = vset.pattern.permute.xlu1 %v726_v4  ;;  %470 = vperm.xlu0 %666, %v900_v42   ;;  %v73_v9 = vsel %vm63_vm8, %v70_v58, %v72_v1  ;;  %v77_v11 = vsel %vm63_vm8, %v74_v59, %v76_v2  ;;  %vm146_vm11 = vcmp.gt.s32.totalorder %v145_v3, 0  ;;  %v85_v13 = vmul.u32 %v78_v40, %v69_v0 }
  0x24   :  { %423 = vperm.xlu1 %665, %v874_v14   ;;  %v925_v12 = vmul.u32.u64.low %v78_v40, %v77_v11  ;;  %v926_v15 = vmul.u32.u64.high %v78_v40, %v77_v11, %v925_v12  ;;  %v928_v19 = vmul.u32.u64.low %v78_v40, %v73_v9  ;;  %v929_v21 = vmul.u32.u64.high %v78_v40, %v73_v9, %v928_v19 }
  0x25   :  { %v304_v22 = vshll.u32 %v919_v7, 30  ;;  %v147_v27 = vsel %vm146_vm11, %v145_v3, 0  ;;  %v135_v29 = vand.u32 2147483647, %v822_v20  ;;  %vm243_vm4 = vcmp.lt.s32.totalorder %v793_v5, 0 }
  0x26   :  { %v941_v28 = vadd.s32 %v928_v19, %v926_v15  ;;  %vm87_vm12 = vc.u32 %v926_v15, %v928_v19  ;;  %v88_v31 = vadd.s32 1, %v929_v21  ;;  %v149_v35 = vand.u32 31, %v147_v27 }
  0x27   :  { %667 = vset.pattern.permute.xlu0 %v734_v8  ;;  %v937_v26 = vsub.s32 %v301_v52, %v304_v22  ;;  %v142_v48 = vand.u32 8388607, %v135_v29  ;;  %v148_v53 = vshrl.u32 %v147_v27, 5  ;;  %vm1003_vm5 = vcmp.le.f32.partialorder %v241_v6, 0.7853982 }
  0x28   :  { %428 = vperm.xlu1 %665, %v900_v42   ;;  %v89_v37 = vsel %vm87_vm12, %v88_v31, %v929_v21  ;;  %v150_v44 = vsub.s32 32, %v149_v35  ;;  %v152_v45 = vshll.u32 %v728_v32, %v149_v35  ;;  %v155_v46 = vshll.u32 %v729_v34, %v149_v35 }
  0x29   :  { %v307_v33 = vsub.s32 0, %v937_v26  ;;  %v90_v43 = vadd.s32 %v89_v37, %v85_v13  ;;  %v158_v49 = vshll.u32 %v730_v36, %v149_v35  ;;  %v161_v51 = vshll.u32 %v731_v39, %v149_v35 }
  0x2a   :  { %v153_v54 = vshrl.u32 %v729_v34, %v150_v44  ;;  %v156_v55 = vshrl.u32 %v730_v36, %v150_v44  ;;  %v159_v58 = vshrl.u32 %v731_v39, %v150_v44  ;;  %v162_v59 = vshrl.u32 %v732_v41, %v150_v44 }
  0x2b   :  { %v636_v40 = vmin.u32 %v307_v33, %v937_v26  ;;  %v91_v52 = vadd.s32 536870912, %v90_v43  ;;  %v164_v60 = vshll.u32 %v732_v41, %v149_v35  ;;  %v165_v0 = vshrl.u32 %v733_v50, %v150_v44 }
  0x2c   :  { %669 = vset.pattern.permute.xlu1 %v727_v30  ;;  %v546_v30 = vld [vmem:[%s1086_s5] sm:$0xff]  ;;  %v154_v62 = vor.u32 %v153_v54, %v152_v45  ;;  %v157_v63 = vor.u32 %v156_v55, %v155_v46  ;;  %v151_v1 = vshrl.u32 %v728_v32, %v150_v44  ;;  %v160_v2 = vor.u32 %v159_v58, %v158_v49 }
  0x2d   :  { %474 = vperm.xlu1 %669, %v935_v24   ;;  %v309_v47 = vclz %v636_v40  ;;  %v965_v61 = vshrl.u32 %v91_v52, 30  ;;  %v163_v34 = vor.u32 %v162_v59, %v161_v51  ;;  %v297_v36 = vadd.s32 %v881_v18, %v878_v16 }
  0x2e   :  { %v166_v41 = vor.u32 %v165_v0, %v164_v60  ;;  %v143_v12 = vor.u32 8388608, %v142_v48  ;;  %vm167_vm14 = vcmp.lt.s32.totalorder %v148_v53, 1  ;;  %vm170_vm15 = vcmp.lt.s32.totalorder %v148_v53, 4 }
  0x2f   :  { %v637_v57 = vadd.s32 4294967294, %v309_v47  ;;  %v93_v39 = vshll.u32 %v965_v61, 30  ;;  %vm168_vm0 = vcmp.lt.s32.totalorder %v148_v53, 2  ;;  %vm169_vm1 = vcmp.lt.s32.totalorder %v148_v53, 3 }
  0x30   :  { %v171_v19 = vsel %vm167_vm14, %v151_v1, %v154_v62  ;;  %v172_v21 = vsel %vm170_vm15, %v160_v2, 2102212464  ;;  %v175_v22 = vsel %vm167_vm14, %v154_v62, %v157_v63  ;;  %v176_v31 = vsel %vm170_vm15, %v163_v34, 920167782 }
  0x31   :  { %670 = vset.pattern.permute.xlu1 %v726_v4  ;;  %vm638_vm13 = vcmp.lt.s32.totalorder %v637_v57, 0  ;;  %v94_v15 = vsub.s32 %v90_v43, %v93_v39  ;;  %v173_v27 = vsel %vm169_vm1, %v157_v63, %v172_v21  ;;  %v183_v33 = vshll.u32 %v143_v12, 8 }
  0x32   :  { %555 = vperm.xlu1 %670, %v546_v30   ;;  %v312_v3 = vsel %vm638_vm13, 0, %v637_v57  ;;  %v174_v35 = vsel %vm168_vm0, %v171_v19, %v173_v27  ;;  %v177_v37 = vsel %vm169_vm1, %v160_v2, %v176_v31  ;;  %v179_v30 = vsel %vm167_vm14, %v157_v63, %v160_v2 }
  0x33   :  { %v313_v9 = vsub.s32 32, %v312_v3  ;;  %v317_v11 = vsub.s32 4294967266, %v312_v3  ;;  %v314_v50 = vshll.u32 %v937_v26, %v312_v3  ;;  %v96_v18 = vsub.s32 0, %v94_v15 }
  0x34   :  { %v178_v40 = vsel %vm168_vm0, %v175_v22, %v177_v37  ;;  %v180_v46 = vsel %vm170_vm15, %v166_v41, 1326507024  ;;  %v190_v1 = vmul.u32 %v183_v33, %v174_v35  ;;  %v116_v19 = vsub.s32 4, %v965_v61 }
  0x35   :  { %v318_v32 = vadd.s32 127, %v317_v11  ;;  %v315_v16 = vshrl.u32 %v297_v36, %v313_v9  ;;  %v628_v26 = vmin.u32 %v96_v18, %v94_v15  ;;  %v181_v51 = vsel %vm169_vm1, %v163_v34, %v180_v46 }
  0x36   :  { %671 = vset.pattern.permute.xlu1 %v734_v8  ;;  %v984_v47 = vmul.u32.u64.low %v183_v33, %v178_v40  ;;  %v985_v48 = vmul.u32.u64.high %v183_v33, %v178_v40, %v984_v47  ;;  %v182_v52 = vsel %vm168_vm0, %v179_v30, %v181_v51  ;;  %vm32_vm6 = vcmp.lt.s32.totalorder %v806_v10, 0 }
  0x37   :  { %v319_v13 = vshll.u32 %v318_v32, 23  ;;  %v316_v43 = vor.u32 %v315_v16, %v314_v50  ;;  %v98_v44 = vclz %v628_v26  ;;  %vm31_vm7 = vcmp.le.f32.partialorder %v30_v25, 0.7853982 }
  0x38   :  { %v989_v54 = vmul.u32.u64.low %v183_v33, %v182_v52  ;;  %v990_v55 = vmul.u32.u64.high %v183_v33, %v182_v52, %v989_v54  ;;  %v193_v0 = vadd.s32 1, %v985_v48  ;;  %v117_v27 = vsel %vm32_vm6, %v116_v19, %v965_v61 }
  0x39   :  { %v320_v45 = vor.u32 4788187, %v319_v13  ;;  %v629_v49 = vadd.s32 4294967294, %v98_v44  ;;  %v323_v58 = vcvt.s32.f32 %v316_v43  ;;  %v327_v33 = vsub.s32 4, %v919_v7 }
  0x3a   :  { %v191_v34 = vadd.s32 %v984_v47, %v990_v55  ;;  %vm192_vm3 = vc.u32 %v990_v55, %v984_v47  ;;  %v119_v37 = vsel %vm31_vm7, 0, %v117_v27  ;;  %vm137_vm15 = vcmp.lt.s32.totalorder %v822_v20, 0 }
  0x3b   :  { %vm630_vm2 = vcmp.lt.s32.totalorder %v629_v49, 0  ;;  %v321_v57 = vand.u32 2147483647, %v320_v45  ;;  %v194_v41 = vsel %vm192_vm3, %v193_v0, %v985_v48  ;;  %v123_v25 = vadd.s32 3, %v119_v37 }
  0x3c   :  { %v101_v59 = vsel %vm630_vm2, 0, %v629_v49  ;;  %v195_v9 = vadd.s32 %v194_v41, %v190_v1  ;;  %v328_v61 = vsel %vm243_vm4, %v327_v33, %v919_v7  ;;  %vm136_vm0 = vcmp.le.f32.partialorder %v135_v29, 0.7853982 }
  0x3d   :  { %v102_v60 = vsub.s32 32, %v101_v59  ;;  %v103_v62 = vshll.u32 %v94_v15, %v101_v59  ;;  %v106_v63 = vsub.s32 4294967266, %v101_v59  ;;  %v324_v53 = vmul.f32 %v323_v58, %v321_v57 }
  0x3e   :  { %v196_v50 = vadd.s32 536870912, %v195_v9  ;;  %v330_v45 = vsel %vm1003_vm5, 0, %v328_v61  ;;  %v124_v46 = vand.u32 3, %v123_v25  ;;  %vm333_vm1 = vweird.f32 %v793_v5 }
  0x3f   :  { %v104_v2 = vshrl.u32 %v941_v28, %v102_v60  ;;  %v107_v36 = vadd.s32 127, %v106_v63  ;;  %v325_v15 = vxor.u32 2147483648, %v324_v53  ;;  %v334_v48 = vadd.s32 3, %v330_v45 }
  0x40   :  { %v999_v28 = vshrl.u32 %v196_v50, 30  ;;  %vm129_vm9 = vcmp.eq.s32.totalorder %v124_v46, 2  ;;  %vm126_vm10 = vcmp.eq.s32.totalorder %v124_v46, 0  ;;  %vm125_vm11 = vcmp.lt.s32.totalorder %v124_v46, 2 }
  0x41   :  { %v105_v3 = vor.u32 %v104_v2, %v103_v62  ;;  %v108_v39 = vshll.u32 %v107_v36, 23  ;;  %v326_v22 = vsel %vm243_vm4, %v325_v15, %v324_v53  ;;  %v335_v63 = vand.u32 3, %v334_v48 }
  0x42   :  { %v198_v21 = vshll.u32 %v999_v28, 30  ;;  %v329_v26 = vsel %vm1003_vm5, %v793_v5, %v326_v22  ;;  %vm122_vm5 = vweird.f32 %v806_v10 }
  0x43   :  { %v109_v11 = vor.u32 4788187, %v108_v39  ;;  %v112_v12 = vcvt.s32.f32 %v105_v3  ;;  %vm337_vm12 = vcmp.eq.s32.totalorder %v335_v63, 0  ;;  %vm340_vm13 = vcmp.eq.s32.totalorder %v335_v63, 2 }
  0x44   :  { %v199_v31 = vsub.s32 %v195_v9, %v198_v21  ;;  %vm336_vm14 = vcmp.lt.s32.totalorder %v335_v63, 2 }
  0x45   :  { %v110_v32 = vand.u32 2147483647, %v109_v11 }
  0x46   :  { %v201_v40 = vsub.s32 0, %v199_v31 }
  0x47   :  { %v113_v16 = vmul.f32 %v112_v12, %v110_v32 }
  0x48   :  { %v632_v30 = vmin.u32 %v201_v40, %v199_v31 }
  0x49   :  { %v114_v13 = vxor.u32 2147483648, %v113_v16 }
  0x4a   :  { %v203_v43 = vclz %v632_v30 }
  0x4b   :  { %v115_v6 = vsel %vm32_vm6, %v114_v13, %v113_v16  ;;  %vm227_vm6 = vweird.f32 %v822_v20 }
  0x4c   :  { %v118_v35 = vsel %vm31_vm7, %v806_v10, %v115_v6  ;;  %v633_v44 = vadd.s32 4294967294, %v203_v43  ;;  %vm600_vm7 = vcmask 1041408  }
  0x4d   :  { %675 = vcosq.f32 %v118_v35 }
  0x4e   :  { %677 = vsinq.f32 %v118_v35  ;;  %vm634_vm8 = vcmp.lt.s32.totalorder %v633_v44, 0 }
  0x4f   :  { %679 = vcosq.f32 %v329_v26  ;;  %v206_v47 = vsel %vm634_vm8, 0, %v633_v44 }
  0x50   :  { %681 = vsinq.f32 %v329_v26  ;;  %v207_v49 = vsub.s32 32, %v206_v47  ;;  %v208_v51 = vshll.u32 %v199_v31, %v206_v47  ;;  %v211_v52 = vsub.s32 4294967266, %v206_v47 }
  0x52   :  { %v209_v58 = vshrl.u32 %v191_v34, %v207_v49  ;;  %v212_v7 = vadd.s32 127, %v211_v52  ;;  %v221_v34 = vsub.s32 4, %v999_v28  ;;  %v437_v52 = vlaneseq }
  0x54   :  { %v210_v1 = vor.u32 %v209_v58, %v208_v51  ;;  %v213_v2 = vshll.u32 %v212_v7, 23  ;;  %v222_v19 = vsel %vm137_vm15, %v221_v34, %v999_v28  ;;  %v438_v58 = vshrl.u32 %v437_v52, 7 }
  0x55   :  { %v224_v22 = vsel %vm136_vm0, 0, %v222_v19 }
  0x56   :  { %v214_v3 = vor.u32 4788187, %v213_v2  ;;  %v217_v39 = vcvt.s32.f32 %v210_v1  ;;  %v228_v27 = vadd.s32 3, %v224_v22 }
  0x57   :  { %v676_v54 = vpop.eup %675 }
  0x58   :  { %v678_v55 = vpop.eup %677  ;;  %v130_v57 = vxor.u32 2147483648, %v676_v54  ;;  %v215_v11 = vand.u32 2147483647, %v214_v3  ;;  %v229_v33 = vand.u32 3, %v228_v27  ;;  %v551_v3 = vld [vmem:[%s1086_s5 + $0x28] sm:$0xff] }
  0x59   :  { %v680_v59 = vpop.eup %679  ;;  %v127_v60 = vxor.u32 2147483648, %v678_v55 }
  0x5a   :  { %v682_v62 = vpop.eup %681  ;;  %v131_v0 = vsel %vm129_vm9, %v130_v57, %v678_v55  ;;  %v341_v9 = vxor.u32 2147483648, %v680_v59  ;;  %v218_v12 = vmul.f32 %v217_v39, %v215_v11  ;;  %vm234_vm2 = vcmp.eq.s32.totalorder %v229_v33, 2  ;;  %v547_v55 = vld [vmem:[%s1086_s5 + $0x8] sm:$0xff] }
  0x5b   :  { %v128_v36 = vsel %vm126_vm10, %v676_v54, %v127_v60  ;;  %v338_v41 = vxor.u32 2147483648, %v682_v62  ;;  %vm231_vm3 = vcmp.eq.s32.totalorder %v229_v33, 0  ;;  %vm230_vm4 = vcmp.lt.s32.totalorder %v229_v33, 2 }
  0x5c   :  { %v1024_v53 = vsel %vm125_vm11, %v128_v36, %v131_v0  ;;  %v342_v15 = vsel %vm340_vm13, %v341_v9, %v682_v62  ;;  %v219_v32 = vxor.u32 2147483648, %v218_v12  ;;  %v548_v62 = vld [vmem:[%s1086_s5 + $0x10] sm:$0xff] }
  0x5d   :  { %v339_v50 = vsel %vm337_vm12, %v680_v59, %v338_v41  ;;  %v552_v59 = vld [vmem:[%s1086_s5 + $0x30] sm:$0x3] }
  0x5e   :  { %v343_v16 = vsel %vm336_vm14, %v339_v50, %v342_v15  ;;  %v220_v18 = vsel %vm137_vm15, %v219_v32, %v218_v12 }
  0x5f   :  { %v223_v21 = vsel %vm136_vm0, %v822_v20, %v220_v18  ;;  %v344_v13 = vsel %vm333_vm1, nan, %v343_v16  ;;  %v549_v20 = vld [vmem:[%s1086_s5 + $0x18] sm:$0xff] }
  0x60   :  { %683 = vcosq.f32 %v223_v21  ;;  %v352_v31 = vmul.f32 %v817_v17, %v344_v13  ;;  %v353_v35 = vmul.f32 %v828_v23, %v344_v13  ;;  %v354_v5 = vmul.f32 %v843_v38, %v344_v13 }
  0x61   :  { %685 = vsinq.f32 %v223_v21  ;;  %v357_v43 = vmul.f32 %v900_v42, %v344_v13  ;;  %v355_v46 = vmul.f32 %v861_v56, %v344_v13  ;;  %v356_v42 = vmul.f32 %v874_v14, %v344_v13  ;;  %v550_v14 = vld [vmem:[%s1086_s5 + $0x20] sm:$0xff] }
  0x62   :  { %v358_v54 = vmul.f32 %v935_v24, %v344_v13 }
  0x6a   :  { %v684_v28 = vpop.eup %683 }
  0x6b   :  { %v686_v37 = vpop.eup %685  ;;  %v235_v25 = vxor.u32 2147483648, %v684_v28 }
  0x6c   :  { %v232_v17 = vxor.u32 2147483648, %v686_v37 }
  0x6d   :  { %v236_v44 = vsel %vm234_vm2, %v235_v25, %v686_v37 }
  0x6e   :  { %v233_v23 = vsel %vm231_vm3, %v684_v28, %v232_v17 }
  0x6f   :  { %v237_v47 = vsel %vm230_vm4, %v233_v23, %v236_v44 }
  0x70   :  { %v238_v60 = vsel %vm227_vm6, nan, %v237_v47 }
  0x74   :  { %v374_v6 = vpop.permute.xlu0 %373  ;;  %v378_v26 = vpop.permute.xlu1 %377 }
  0x75   :  { %v394_v29 = vadd.f32 %v374_v6, %v352_v31  ;;  %v396_v45 = vadd.f32 %v378_v26, %v354_v5 }
  0x77   :  { %499 = vperm.xlu0 %667, %v394_v29  }
  0x78   :  { %v376_v40 = vpop.permute.xlu0 %375  ;;  %v380_v30 = vpop.permute.xlu1 %379 }
  0x79   :  { %v395_v61 = vadd.f32 %v376_v40, %v353_v35  ;;  %v397_v51 = vadd.f32 %v380_v30, %v355_v46 }
  0x7b   :  { %504 = vperm.xlu1 %671, %v395_v61   ;;  %668 = vset.pattern.permute.xlu0 %v726_v4 }
  0x7c   :  { %433 = vperm.xlu0 %668, %v935_v24   ;;  %v384_v38 = vpop.permute.xlu1 %383  ;;  %v382_v49 = vpop.permute.xlu0 %381  ;;  %v133_v24 = vsel %vm122_vm5, nan, %v1024_v53 }
  0x7d   :  { %v399_v48 = vadd.f32 %v384_v38, %v357_v43  ;;  %v398_v56 = vadd.f32 %v382_v49, %v356_v42 }
  0x7f   :  { %509 = vperm.xlu1 %671, %v396_v45  }
  0x80   :  { %672 = vset.pattern.permute.xlu0 %v734_v8  ;;  %v386_v57 = vpop.permute.xlu0 %385  ;;  %v439_v8 = vsub.s32 0, %v438_v58 }
  0x81   :  { %524 = vperm.xlu0 %672, %v399_v48   ;;  %v400_v7 = vadd.f32 %v386_v57, %v358_v54 }
  0x82   :  { %v440_v0 = vrot.slane %v133_v24, %v439_v8  ;;  %v481_v10 = vrot.slane %v238_v60, %v439_v8 }
  0x83   :  { %514 = vperm.xlu1 %671, %v397_v51  }
  0x85   :  { %673 = vset.pattern.permute.xlu0 %v726_v4 }
  0x86   :  { %560 = vperm.xlu0 %673, %v547_v55  }
  0x87   :  { %519 = vperm.xlu1 %671, %v398_v56  }
  0x8a   :  { %575 = vperm.xlu0 %673, %v550_v14  }
  0x8b   :  { %529 = vperm.xlu1 %671, %v400_v7  }
  0x8d   :  { %v404_v63 = vpop.permute.xlu1 %403 }
  0x8e   :  { %585 = vperm.xlu0 %673, %v552_v59   ;;  %v442_v1 = vmul.f32 %v440_v0, %v404_v63 }
  0x8f   :  { %674 = vset.pattern.permute.xlu1 %v726_v4 }
  0x90   :  { %565 = vperm.xlu1 %674, %v548_v62  }
  0x91   :  { %v409_v2 = vpop.permute.xlu0 %408 }
  0x92   :  { %v451_v36 = vpop.permute.xlu1 %450  ;;  %v443_v39 = vmul.f32 %v440_v0, %v409_v2 }
  0x93   :  { %v483_v53 = vmul.f32 %v481_v10, %v451_v36 }
  0x94   :  { %570 = vperm.xlu1 %674, %v549_v20  }
  0x95   :  { %v414_v41 = vpop.permute.xlu0 %413  ;;  %v490_v9 = vadd.f32 %v483_v53, %v442_v1 }
  0x96   :  { %v455_v11 = vpop.permute.xlu1 %454  ;;  %v444_v34 = vmul.f32 %v440_v0, %v414_v41 }
  0x97   :  { %v484_v4 = vmul.f32 %v481_v10, %v455_v11 }
  0x98   :  { %580 = vperm.xlu1 %674, %v551_v3  }
  0x99   :  { %v491_v12 = vadd.f32 %v484_v4, %v443_v39  ;;  %v419_v15 = vpop.permute.xlu0 %418 }
  0x9a   :  { %v459_v50 = vpop.permute.xlu1 %458  ;;  %v445_v19 = vmul.f32 %v440_v0, %v419_v15 }
  0x9b   :  { %v485_v32 = vmul.f32 %v481_v10, %v459_v50 }
  0x9d   :  { %v492_v16 = vadd.f32 %v485_v32, %v444_v34 }
  0x9e   :  { %v463_v18 = vpop.permute.xlu1 %462  ;;  %v467_v21 = vpop.permute.xlu0 %466 }
  0x9f   :  { %v486_v22 = vmul.f32 %v481_v10, %v463_v18  ;;  %v487_v27 = vmul.f32 %v481_v10, %v467_v21  ;;  %v610_v21 = vstv %s1087_s6 }
  0xa1   :  { %v493_v13 = vadd.f32 %v486_v22, %v445_v19 }
  0xa2   :  { %v471_v33 = vpop.permute.xlu0 %470 }
  0xa3   :  { %v424_v31 = vpop.permute.xlu1 %423  ;;  %v488_v26 = vmul.f32 %v481_v10, %v471_v33 }
  0xa4   :  { %v446_v6 = vmul.f32 %v440_v0, %v424_v31 }
  0xa6   :  { %v494_v29 = vadd.f32 %v487_v27, %v446_v6 }
  0xa7   :  { %v429_v35 = vpop.permute.xlu1 %428 }
  0xa8   :  { %v447_v28 = vmul.f32 %v440_v0, %v429_v35 }
  0xaa   :  { %v495_v5 = vadd.f32 %v488_v26, %v447_v28 }
  0xac   :  { %v475_v37 = vpop.permute.xlu1 %474 }
  0xad   :  { %v489_v44 = vmul.f32 %v481_v10, %v475_v37 }
  0xb1   :  { %v556_v40 = vpop.permute.xlu1 %555 }
  0xf6   :  { %v500_v30 = vpop.permute.xlu0 %499 }
  0xf7   :  { %v532_v25 = vadd.f32 %v500_v30, %v490_v9 }
  0xf9   :  { %687 = vtanh.f32 %v532_v25 }
  0xfa   :  { %v505_v61 = vpop.permute.xlu1 %504 }
  0xfb   :  { %v533_v43 = vadd.f32 %v505_v61, %v491_v12  ;;  %v434_v17 = vpop.permute.xlu0 %433 }
  0xfc   :  { %v448_v45 = vmul.f32 %v440_v0, %v434_v17 }
  0xfd   :  { %689 = vtanh.f32 %v533_v43 }
  0xfe   :  { %v510_v46 = vpop.permute.xlu1 %509  ;;  %v496_v23 = vadd.f32 %v489_v44, %v448_v45 }
  0xff   :  { %v534_v38 = vadd.f32 %v510_v46, %v492_v16 }
 0x100   :  { %v525_v47 = vpop.permute.xlu0 %524 }
 0x101   :  { %691 = vtanh.f32 %v534_v38  ;;  %v537_v55 = vadd.f32 %v525_v47, %v495_v5 }
 0x102   :  { %v515_v48 = vpop.permute.xlu1 %514 }
 0x103   :  { %v535_v49 = vadd.f32 %v515_v48, %v493_v13  ;;  %v688_v51 = vpop.eup %687 }
 0x104   :  { %v588_v57 = vmul.f32 %v688_v51, %v556_v40 }
 0x105   :  { %v561_v42 = vpop.permute.xlu0 %560  ;;  %693 = vtanh.f32 %v535_v49 }
 0x106   :  { %v520_v52 = vpop.permute.xlu1 %519 }
 0x107   :  { %v690_v56 = vpop.eup %689  ;;  %v536_v54 = vadd.f32 %v520_v52, %v494_v29 }
 0x108   :  { %v589_v58 = vmul.f32 %v690_v56, %v561_v42 }
 0x109   :  { %695 = vtanh.f32 %v536_v54  ;;  %v576_v62 = vpop.permute.xlu0 %575 }
 0x10a   :  { %v595_v7 = vadd.f32 %v589_v58, %v588_v57  ;;  %v530_v14 = vpop.permute.xlu1 %529  ;;  %697 = vtanh.f32 %v537_v55 }
 0x10b   :  { %v538_v8 = vadd.f32 %v530_v14, %v496_v23  ;;  %v692_v24 = vpop.eup %691 }
 0x10d   :  { %699 = vtanh.f32 %v538_v8  ;;  %v586_v39 = vpop.permute.xlu0 %585 }
 0x10f   :  { %v566_v59 = vpop.permute.xlu1 %565  ;;  %v694_v63 = vpop.eup %693 }
 0x110   :  { %v590_v60 = vmul.f32 %v692_v24, %v566_v59 }
 0x112   :  { %v596_v0 = vadd.f32 %v595_v7, %v590_v60 }
 0x113   :  { %v696_v10 = vpop.eup %695  ;;  %v571_v20 = vpop.permute.xlu1 %570 }
 0x114   :  { %v591_v1 = vmul.f32 %v694_v63, %v571_v20  ;;  %v698_v2 = vpop.eup %697  ;;  %v592_v36 = vmul.f32 %v696_v10, %v576_v62 }
 0x116   :  { %v597_v53 = vadd.f32 %v596_v0, %v591_v1 }
 0x117   :  { %v700_v3 = vpop.eup %699  ;;  %v581_v41 = vpop.permute.xlu1 %580 }
 0x118   :  { %v594_v9 = vmul.f32 %v700_v3, %v586_v39  ;;  %v593_v11 = vmul.f32 %v698_v2, %v581_v41  ;;  %v598_v4 = vadd.f32 %v597_v53, %v592_v36 }
 0x11a   :  { %v601_v34 = vsel %vm600_vm7, %v594_v9, 0.0  ;;  %v599_v12 = vadd.f32 %v598_v4, %v593_v11 }
 0x11c   :  { %v602_v50 = vadd.f32 %v601_v34, %v599_v12 }
 0x11e   :  { %v603_v15 = vrot.slane %v602_v50, 4 }
 0x120   :  { %v604_v32 = vadd.f32 %v603_v15, %v602_v50 }
 0x122   :  { %v605_v19 = vrot.slane %v604_v32, 2 }
 0x124   :  { %v606_v16 = vadd.f32 %v605_v19, %v604_v32 }
 0x126   :  { %v607_v18 = vrot.slane %v606_v16, 1 }
 0x128   :  { %v608_v22 = vadd.f32 %v607_v18, %v606_v16 }
 0x12a   :  { %v611_v13 = vadd.f32 %v610_v21, %v608_v22 }
 0x12c   :  { %612 = vst [vmem:[#allocation4] sm:$0x1] %v611_v13 }
 0x12d   :  { %712 = shalt.err (!%p709_p4)
}
 0x12e   :  { %s713_s25 = scalar_lea.hbm %s1088_s7, 16 }
 0x12f   :  { %p714_p5 = scmp.ne.s32.totalorder %s1088_s7, %s713_s25  ;;  %p717_p6 = scmp.lt.u32.totalorder %s713_s25, %s1088_s7 }
 0x131   :  { %p719_p7 = pnand %p717_p6, %p714_p5 }
 0x133   :  { %722 = shalt.err (!%p719_p7)
}
 0x134   :  { %622 = dma.vmem_to_hbm [thread:$0]  %s620_s22, 16, %s1088_s7, [#allocation5]  }
 0x135   :  { %723 = dma.done.wait [#allocation5], 16  }
 0x136   :  { %724 = vsyncadd [#allocation5], 4294967280 }
 0x137   :  { %626 = vsyncpa [#allocation5], 1 }

</bundles_post_ra>
